<compile_context>
chip_gen: v5e
topology: v5e:2x2
jax: 0.10.0
libtpu: 0.0.40
codegen_flags: <defaults>
</compile_context>

<pallas_src>
import jax
import jax.numpy as jnp
from jax import lax
from jax.experimental import pallas as pl
from jax.experimental.pallas import tpu as pltpu


# --------------------------------------------------------------------------
# Kernel 1: fused im2col-3x3 conv (BN scale folded in) + bias + ReLU + 1x1 conv(+bias)
#           -> bf16 class-major output tile
# --------------------------------------------------------------------------
def conv_fused_kernel(xc_ref, w3_ref, bnb_ref, w1_ref, b1_ref, o_ref):
    # xc_ref  : (TM, Kp)       bf16  im2col rows (K = 9*Cin zero-padded to Kp)
    # w3_ref  : (Kp, Cmid_p)   bf16  3x3 conv weights with BN scale folded in
    # bnb_ref : (1, Cmid_p)    f32   folded BN bias
    # w1_ref  : (Cmid_p, Cp)   bf16  1x1 conv weights (classes zero-padded to Cp)
    # b1_ref  : (1, Cp)        f32   1x1 conv bias (zero-padded)
    # o_ref   : (Cp, TM)       bf16  class-major output tile (lane dim = TM, dense)
    acc = jnp.dot(xc_ref[...], w3_ref[...], preferred_element_type=jnp.float32)
    h = jnp.maximum(acc + bnb_ref[...], 0.0)                         # BN bias + ReLU
    out = jnp.dot(h.astype(jnp.bfloat16), w1_ref[...],
                  preferred_element_type=jnp.float32) + b1_ref[...]
    o_ref[...] = out.T.astype(o_ref.dtype)                           # class-major bf16


# --------------------------------------------------------------------------
# Kernel 2: bilinear upsample  (A_h_tile @ Y @ A_w^T), writes NCHW directly
# --------------------------------------------------------------------------
def upsample_kernel(y_ref, ah_ref, awt_ref, o_ref):
    # y_ref   : (1, 1, H, W)      bf16  one (class, image) plane of the conv output
    # ah_ref  : (TH, H)           bf16  row-interpolation rows for this Hout tile
    # awt_ref : (W, Wout)         bf16  column-interpolation matrix, transposed
    # o_ref   : (1, 1, TH, Wout)  f32   final NCHW output tile (Wout = lane dim)
    zh = jnp.dot(ah_ref[...], y_ref[0, 0], preferred_element_type=jnp.float32)
    o_ref[0, 0] = jnp.dot(zh.astype(jnp.bfloat16), awt_ref[...],
                          preferred_element_type=jnp.float32)


# --------------------------------------------------------------------------
# Helpers (plain JAX glue)
# --------------------------------------------------------------------------
def _round_up(x, m):
    return (x + m - 1) // m * m


def _pick_m_tile(M, Kp, Cmid_p, Cp, budget=36 << 20):
    """Largest TM in {2048..128} dividing M (multiple of 128) whose double-buffered
    tiles + resident weights fit `budget`.  Falls back to TM = M (single block)."""
    fixed = 2 * (Kp * Cmid_p * 2 + Cmid_p * 4 + Cmid_p * Cp * 2 + Cp * 4)

    def total_bytes(d):
        return fixed + 2 * (d * Kp * 2 + Cp * d * 2)

    for d in (2048, 1024, 512, 256, 128):
        if M % d == 0 and total_bytes(d) <= budget:
            return d, total_bytes(d)
    return M, total_bytes(M)


def _pick_row_tile(total, target=512):
    """Largest divisor of `total` that is <= target and a multiple of 8 (or total)."""
    for d in range(min(total, target), 0, -1):
        if total % d == 0 and (d % 8 == 0 or d == total):
            return d
    return total


def bilinear_matrix(in_size, scale):
    """Interpolation matrix A (out, in) for bilinear, align_corners=False."""
    out_size = in_size * scale
    o = jnp.arange(out_size, dtype=jnp.float32)
    src = jnp.maximum((o + 0.5) / float(scale) - 0.5, 0.0)
    i0 = jnp.minimum(jnp.floor(src).astype(jnp.int32), in_size - 1)
    i1 = jnp.minimum(i0 + 1, in_size - 1)
    w1 = src - i0.astype(jnp.float32)
    w0 = 1.0 - w1
    A = (w0[:, None] * jax.nn.one_hot(i0, in_size, dtype=jnp.float32)
         + w1[:, None] * jax.nn.one_hot(i1, in_size, dtype=jnp.float32))
    return A


def bisenet_output_forward(x_nchw, params, up_factor):
    """Pallas implementation of BiSeNetOutput.forward.  x_nchw: (N, Cin, H, W)."""
    w3, gamma, beta, run_mean, run_var, eps, w1, b1 = (
        params["w3"], params["gamma"], params["beta"], params["run_mean"],
        params["run_var"], params["eps"], params["w1"], params["b1"])

    N, Cin, H, W = x_nchw.shape
    Cmid = w3.shape[3]
    Ncls = w1.shape[1]
    Hout, Wout = H * up_factor, W * up_factor
    M = N * H * W
    K = 9 * Cin
    Kp = _round_up(K, 128)
    Cmid_p = _round_up(Cmid, 128)
    Cp = _round_up(Ncls, 128)

    # ---- fold BN (inference form): scale into the 3x3 weights, bias kept separate ---
    inv_std = 1.0 / jnp.sqrt(run_var + eps)
    scale = gamma * inv_std
    bn_bias = beta - run_mean * scale

    w3_p = jnp.pad(w3.reshape(K, Cmid) * scale[None, :],
                   ((0, Kp - K), (0, Cmid_p - Cmid))).astype(jnp.bfloat16)
    bnb_p = jnp.pad(bn_bias, (0, Cmid_p - Cmid)).reshape(1, Cmid_p).astype(jnp.float32)
    w1_p = jnp.pad(w1, ((0, Cmid_p - Cmid), (0, Cp - Ncls))).astype(jnp.bfloat16)
    b1_p = jnp.pad(b1, (0, Cp - Ncls)).reshape(1, Cp).astype(jnp.float32)

    # ---- single-pass bf16 im2col with the K->Kp pad folded into the concat ---------
    x_b = jnp.transpose(x_nchw, (0, 2, 3, 1)).astype(jnp.bfloat16)          # NHWC bf16
    xpad = jnp.pad(x_b, ((0, 0), (1, 1), (1, 1), (0, 0)))
    taps = [xpad[:, dy:dy + H, dx:dx + W, :] for dy in range(3) for dx in range(3)]
    if Kp > K:
        taps.append(jnp.zeros((N, H, W, Kp - K), dtype=jnp.bfloat16))
    xc_p = jnp.concatenate(taps, axis=-1).reshape(M, Kp)                    # (M, Kp)

    # ---- kernel 1: fused conv stack, grid over pixel-row tiles, class-major output --
    TM, k1_bytes = _pick_m_tile(M, Kp, Cmid_p, Cp)
    k1_vmem = min(k1_bytes + (16 << 20), 48 << 20)

    y = pl.pallas_call(
        conv_fused_kernel,
        out_shape=jax.ShapeDtypeStruct((Cp, M), jnp.bfloat16),
        grid_spec=pltpu.PrefetchScalarGridSpec(
            num_scalar_prefetch=0,
            grid=(M // TM,),
            in_specs=[
                pl.BlockSpec((TM, Kp), lambda i: (i, 0)),
                pl.BlockSpec((Kp, Cmid_p), lambda i: (0, 0)),
                pl.BlockSpec((1, Cmid_p), lambda i: (0, 0)),
                pl.BlockSpec((Cmid_p, Cp), lambda i: (0, 0)),
                pl.BlockSpec((1, Cp), lambda i: (0, 0)),
            ],
            out_specs=pl.BlockSpec((Cp, TM), lambda i: (0, i)),
        ),
        compiler_params=pltpu.CompilerParams(
            dimension_semantics=("parallel",),
            vmem_limit_bytes=k1_vmem),
    )(xc_p, w3_p, bnb_p, w1_p, b1_p)

    # free reshape: class-major (Cp, M) -> (Cp, N, H, W); no slice/transpose/cast pass
    y_planes = y.reshape(Cp, N, H, W)

    # ---- kernel 2: bilinear upsample, flattened (N*Ncls, Hout tiles) grid ------------
    A_h = bilinear_matrix(H, up_factor).astype(jnp.bfloat16)                # (Hout, H)
    A_wT = bilinear_matrix(W, up_factor).T.astype(jnp.bfloat16)             # (W, Wout)
    TH = _pick_row_tile(Hout, 512)

    k2_bytes = 2 * (H * W * 2 + TH * H * 2 + W * Wout * 2 + TH * Wout * 4)
    k2_vmem = min(k2_bytes + (16 << 20), 48 << 20)

    out = pl.pallas_call(
        upsample_kernel,
        out_shape=jax.ShapeDtypeStruct((N, Ncls, Hout, Wout), jnp.float32),
        grid_spec=pltpu.PrefetchScalarGridSpec(
            num_scalar_prefetch=0,
            grid=(N * Ncls, Hout // TH),
            in_specs=[
                pl.BlockSpec((1, 1, H, W), lambda p, t: (p % Ncls, p // Ncls, 0, 0)),
                pl.BlockSpec((TH, H), lambda p, t: (t, 0)),
                pl.BlockSpec((W, Wout), lambda p, t: (0, 0)),
            ],
            out_specs=pl.BlockSpec((1, 1, TH, Wout),
                                   lambda p, t: (p // Ncls, p % Ncls, t, 0)),
        ),
        compiler_params=pltpu.CompilerParams(
            dimension_semantics=("parallel", "parallel"),
            vmem_limit_bytes=k2_vmem),
    )(y_planes, A_h, A_wT)

    return out                                               # NCHW f32


# --------------------------------------------------------------------------
# Pure-JAX reference (f32, for a correctness sanity check)
# --------------------------------------------------------------------------
def reference_forward(x_nchw, params, up_factor):
    w3, gamma, beta, rm, rv, eps, w1, b1 = (
        params["w3"], params["gamma"], params["beta"], params["run_mean"],
        params["run_var"], params["eps"], params["w1"], params["b1"])
    x = jnp.transpose(x_nchw, (0, 2, 3, 1)).astype(jnp.float32)
    y = lax.conv_general_dilated(
        x, w3, window_strides=(1, 1), padding="SAME",
        dimension_numbers=("NHWC", "HWIO", "NHWC"))
    y = (y - rm) / jnp.sqrt(rv + eps) * gamma + beta
    y = jnp.maximum(y, 0.0)
    y = jnp.einsum("nhwc,cd->nhwd", y, w1) + b1
    H, W = x.shape[1], x.shape[2]
    A_h = bilinear_matrix(H, up_factor)
    A_w = bilinear_matrix(W, up_factor)
    up = jnp.einsum("oh,pw,nhwd->nopd", A_h, A_w, y)
    return jnp.transpose(up, (0, 3, 1, 2))


# --------------------------------------------------------------------------
if __name__ == "__main__":
    # small, deterministic configuration
    N, Cin, H, W = 2, 4, 16, 16
    Cmid, Ncls, up_factor = 8, 3, 8

    key = jax.random.PRNGKey(0)
    k_x, k_w3, k_g, k_b, k_w1, k_b1 = jax.random.split(key, 6)

    x = jax.random.normal(k_x, (N, Cin, H, W), dtype=jnp.float32)

    params = {
        # 3x3 conv weight stored HWIO (kh, kw, Cin, Cmid); kaiming-like scale
        "w3": jax.random.normal(k_w3, (3, 3, Cin, Cmid), dtype=jnp.float32) * 0.1,
        "gamma": 1.0 + 0.1 * jax.random.normal(k_g, (Cmid,), dtype=jnp.float32),
        "beta": 0.1 * jax.random.normal(k_b, (Cmid,), dtype=jnp.float32),
        "run_mean": jnp.zeros((Cmid,), dtype=jnp.float32),   # BN inference stats
        "run_var": jnp.ones((Cmid,), dtype=jnp.float32),
        "eps": 1e-5,
        "w1": jax.random.normal(k_w1, (Cmid, Ncls), dtype=jnp.float32) * 0.1,
        "b1": 0.1 * jax.random.normal(k_b1, (Ncls,), dtype=jnp.float32),
    }

    out = bisenet_output_forward(x, params, up_factor)
    out = jax.block_until_ready(out)

    ref = jax.block_until_ready(reference_forward(x, params, up_factor))
    assert out.shape == (N, Ncls, H * up_factor, W * up_factor), out.shape
    # bf16 MXU operands / bf16 intermediate with f32 accumulation -> loose tolerance
    max_err = float(jnp.max(jnp.abs(out - ref)))
    assert max_err < 5e-2, max_err

    print("KERNEL_OK")
</pallas_src>

<mosaic_0001>
module attributes {stable_mosaic.version = 11 : i64} {
  func.func @conv_fused_kernel(%arg0: i32, %arg1: memref<512x128xbf16, #tpu.memory_space<vmem>>, %arg2: memref<128x128xbf16, #tpu.memory_space<vmem>>, %arg3: memref<1x128xf32, #tpu.memory_space<vmem>>, %arg4: memref<128x128xbf16, #tpu.memory_space<vmem>>, %arg5: memref<1x128xf32, #tpu.memory_space<vmem>>, %arg6: memref<128x512xbf16, #tpu.memory_space<vmem>>) attributes {dimension_semantics = [#tpu.dimension_semantics<parallel>], iteration_bounds = array<i64: 1>, scalar_prefetch = 0 : i64, scratch_operands = 0 : i64, tpu.core_type = #tpu.core_type<tc>, window_params = [{transform_indices = @transform_0, window_bounds = array<i64: 512, 128>}, {pipeline_mode = #tpu.pipeline_mode<synchronous>, transform_indices = @transform_1, window_bounds = array<i64: 128, 128>}, {pipeline_mode = #tpu.pipeline_mode<synchronous>, transform_indices = @transform_2, window_bounds = array<i64: 1, 128>}, {pipeline_mode = #tpu.pipeline_mode<synchronous>, transform_indices = @transform_3, window_bounds = array<i64: 128, 128>}, {pipeline_mode = #tpu.pipeline_mode<synchronous>, transform_indices = @transform_4, window_bounds = array<i64: 1, 128>}, {transform_indices = @transform_5, window_bounds = array<i64: 128, 512>}]} {
    %c0 = arith.constant 0 : index
    %c0_0 = arith.constant 0 : index
    %0 = vector.load %arg1[%c0, %c0_0] : memref<512x128xbf16, #tpu.memory_space<vmem>>, vector<512x128xbf16>
    %c0_1 = arith.constant 0 : index
    %c0_2 = arith.constant 0 : index
    %1 = vector.load %arg2[%c0_1, %c0_2] : memref<128x128xbf16, #tpu.memory_space<vmem>>, vector<128x128xbf16>
    %cst = arith.constant dense<0.000000e+00> : vector<512x128xf32>
    %2 = tpu.matmul %0, %1, %cst {dimension_numbers = #tpu.dot_dimension_numbers<[1], [0], [0], [1], [0, 0, 1, 1], [], []>} : vector<512x128xbf16>, vector<128x128xbf16>, vector<512x128xf32> -> vector<512x128xf32>
    %c0_3 = arith.constant 0 : index
    %c0_4 = arith.constant 0 : index
    %3 = vector.load %arg3[%c0_3, %c0_4] : memref<1x128xf32, #tpu.memory_space<vmem>>, vector<1x128xf32>
    %4 = vector.broadcast %3 : vector<1x128xf32> to vector<512x128xf32>
    %5 = arith.addf %2, %4 : vector<512x128xf32>
    %cst_5 = arith.constant 0.000000e+00 : f32
    %6 = vector.broadcast %cst_5 : f32 to vector<512x128xf32>
    %7 = arith.maximumf %5, %6 : vector<512x128xf32>
    %8 = arith.truncf %7 : vector<512x128xf32> to vector<512x128xbf16>
    %c0_6 = arith.constant 0 : index
    %c0_7 = arith.constant 0 : index
    %9 = vector.load %arg4[%c0_6, %c0_7] : memref<128x128xbf16, #tpu.memory_space<vmem>>, vector<128x128xbf16>
    %cst_8 = arith.constant dense<0.000000e+00> : vector<512x128xf32>
    %10 = tpu.matmul %8, %9, %cst_8 {dimension_numbers = #tpu.dot_dimension_numbers<[1], [0], [0], [1], [0, 0, 1, 1], [], []>} : vector<512x128xbf16>, vector<128x128xbf16>, vector<512x128xf32> -> vector<512x128xf32>
    %c0_9 = arith.constant 0 : index
    %c0_10 = arith.constant 0 : index
    %11 = vector.load %arg5[%c0_9, %c0_10] : memref<1x128xf32, #tpu.memory_space<vmem>>, vector<1x128xf32>
    %12 = vector.broadcast %11 : vector<1x128xf32> to vector<512x128xf32>
    %13 = arith.addf %10, %12 : vector<512x128xf32>
    %14 = tpu.transpose %13, [1, 0] : vector<512x128xf32> -> vector<128x512xf32>
    %15 = arith.truncf %14 : vector<128x512xf32> to vector<128x512xbf16>
    %c0_11 = arith.constant 0 : index
    %c0_12 = arith.constant 0 : index
    %16 = vector.load %arg6[%c0_11, %c0_12] : memref<128x512xbf16, #tpu.memory_space<vmem>>, vector<128x512xbf16>
    tpu.vector_store %arg6[%c0_11, %c0_12], %15 {strides = array<i32>} : memref<128x512xbf16, #tpu.memory_space<vmem>>, vector<128x512xbf16>,
    return
  }
  func.func @transform_0(%arg0: i32) -> (i32, i32) {
    %c0_i32 = arith.constant 0 : i32
    %c0_i32_0 = arith.constant 0 : i32
    return %arg0, %c0_i32 : i32, i32
  }
  func.func @transform_1(%arg0: i32) -> (i32, i32) {
    %c0_i32 = arith.constant 0 : i32
    %c0_i32_0 = arith.constant 0 : i32
    %c0_i32_1 = arith.constant 0 : i32
    return %c0_i32, %c0_i32_0 : i32, i32
  }
  func.func @transform_2(%arg0: i32) -> (i32, i32) {
    %c0_i32 = arith.constant 0 : i32
    %c0_i32_0 = arith.constant 0 : i32
    %c0_i32_1 = arith.constant 0 : i32
    return %c0_i32, %c0_i32_0 : i32, i32
  }
  func.func @transform_3(%arg0: i32) -> (i32, i32) {
    %c0_i32 = arith.constant 0 : i32
    %c0_i32_0 = arith.constant 0 : i32
    %c0_i32_1 = arith.constant 0 : i32
    return %c0_i32, %c0_i32_0 : i32, i32
  }
  func.func @transform_4(%arg0: i32) -> (i32, i32) {
    %c0_i32 = arith.constant 0 : i32
    %c0_i32_0 = arith.constant 0 : i32
    %c0_i32_1 = arith.constant 0 : i32
    return %c0_i32, %c0_i32_0 : i32, i32
  }
  func.func @transform_5(%arg0: i32) -> (i32, i32) {
    %c0_i32 = arith.constant 0 : i32
    %c0_i32_0 = arith.constant 0 : i32
    return %c0_i32, %arg0 : i32, i32
  }
}

</mosaic_0001>

<bundles_post_ra>
// kernel: tpu_custom_call.1
= control target key start
LH: loop header
LB: loop body
LE: loop exit
PB: predicated region body
PF: predicated region fallthrough
CT: control target
= control target key end

     0   :  { %10 = vsyncpa [#allocation3], 0  ;;  %s1982_s0 = inlined_call_operand.hbm [shape: bf16[512,128], index: 0, kind: input, shape index: {}]   ;;  %s1983_s1 = inlined_call_operand.hbm [shape: bf16[128,128], index: 1, kind: input, shape index: {}]   ;;  %s1984_s2 = inlined_call_operand.vmem [shape: f32[1,128], index: 2, kind: input, shape index: {}]   ;;  %s1985_s3 = inlined_call_operand.hbm [shape: bf16[128,128], index: 3, kind: input, shape index: {}]   ;;  %s1986_s4 = inlined_call_operand.vmem [shape: f32[1,128], index: 4, kind: input, shape index: {}]   ;;  %s1987_s5 = inlined_call_operand.hbm [shape: bf16[128,512], index: 5, kind: output, shape index: {}]  }
   0x1   :  { %11 = vsyncpa [#allocation6], 0 }
   0x2   :  { %12 = vsyncpa [#allocation4], 0  ;;  %s30_s20 = sshll.u32 %s1983_s1, 4  ;;  %s1698_s21 = smov [#allocation5]   ;;  %s31_s20 = int_to_ptr.hbm [resolvable:$true] %s30_s20 }
   0x3   :  { %s32_s22 = sshll.u32 %s1698_s21, 4  ;;  %s17_s25 = sshll.u32 %s1982_s0, 4  ;;  %s33_s22 = int_to_ptr.vmem [resolvable:$true] %s32_s22  ;;  %s18_s25 = int_to_ptr.hbm [resolvable:$true] %s17_s25 }
   0x4   :  { %s1699_s26 = smov 64   ;;  %s1700_s27 = smov 4  }
   0x5   :  { %38 = dma.hbm_to_vmem [thread:$0]  %s31_s20, 1024, %s33_s22, [#allocation6], %s1699_s26, %s1699_s26, %s1700_s27  }
   0x6   :  { %s1701_s28 = smov [#allocation2]   ;;  %s45_s7 = sshll.u32 %s1985_s3, 4  ;;  %s46_s7 = int_to_ptr.hbm [resolvable:$true] %s45_s7 }
   0x7   :  { %s19_s29 = sshll.u32 %s1701_s28, 4  ;;  %s1702_s1 = smov [#allocation7]   ;;  %s20_s29 = int_to_ptr.vmem [resolvable:$true] %s19_s29 }
   0x8   :  { %25 = dma.hbm_to_vmem [thread:$0]  %s18_s25, 4096, %s20_s29, [#allocation3], %s1699_s26, %s1699_s26, %s1700_s27  }
   0x9   :  { %s47_s8 = sshll.u32 %s1702_s1, 4  ;;  %s48_s8 = int_to_ptr.vmem [resolvable:$true] %s47_s8 }
   0xa   :  { %53 = dma.hbm_to_vmem [thread:$0]  %s46_s7, 1024, %s48_s8, [#allocation6], %s1699_s26, %s1699_s26, %s1700_s27  }
   0xb   :  { %1692 = dma.done.wait [#allocation3], 4096  }
   0xc   :  { %1693 = vsyncadd [#allocation3], 4294963200 }
   0xd   :  { %1694 = dma.done.wait [#allocation6], 2048  }
   0xe   :  { %1695 = vsyncadd [#allocation6], 4294965248  ;;  %v1337_v0 = vld [vmem:[#allocation5 + $0x38] sm:$0xff]  ;;  %v1336_v1 = vld [vmem:[#allocation5 + $0x30] sm:$0xff]  ;;  %s1092_s13 = sshll.u32 %s1987_s5, 4  ;;  %s1704_s14 = smov 256   ;;  %s1093_s13 = int_to_ptr.hbm [resolvable:$true] %s1092_s13 }
   0xf   :  { %392 = vmatpush.bf16.msra.mxu0 %v1337_v0  ;;  %1346 = vmatpush.bf16.msra.mxu2 %v1337_v0  ;;  %v1335_v2 = vld [vmem:[#allocation5 + $0x28] sm:$0xff]  ;;  %v1334_v3 = vld [vmem:[#allocation5 + $0x20] sm:$0xff]  ;;  %v1333_v4 = vld [vmem:[#allocation5 + $0x18] sm:$0xff]  ;;  %s1705_s15 = smov 16  }
  0x10   :  { %v1332_v5 = vld [vmem:[#allocation5 + $0x10] sm:$0xff]  ;;  %v1331_v6 = vld [vmem:[#allocation5 + $0x8] sm:$0xff]  ;;  %v1330_v7 = vld [vmem:[#allocation5] sm:$0xff] }
  0x11   :  { %v1298_v8 = vld [vmem:[#allocation2] sm:$0xff]  ;;  %v1299_v10 = vld [vmem:[#allocation2 + $0x8] sm:$0xff]  ;;  %v1300_v12 = vld [vmem:[#allocation2 + $0x10] sm:$0xff] }
  0x12   :  { %v1314_v9 = vld [vmem:[#allocation2 + $0x80] sm:$0xff]  ;;  %v1315_v11 = vld [vmem:[#allocation2 + $0x88] sm:$0xff]  ;;  %v1316_v13 = vld [vmem:[#allocation2 + $0x90] sm:$0xff] }
  0x13   :  { %393 = vmatpush.bf16.msra.mxu0 %v1336_v1  ;;  %1347 = vmatpush.bf16.msra.mxu2 %v1336_v1  ;;  %v1301_v14 = vld [vmem:[#allocation2 + $0x18] sm:$0xff]  ;;  %v1302_v16 = vld [vmem:[#allocation2 + $0x20] sm:$0xff]  ;;  %v1303_v19 = vld [vmem:[#allocation2 + $0x28] sm:$0xff] }
  0x14   :  { %v1317_v15 = vld [vmem:[#allocation2 + $0x98] sm:$0xff]  ;;  %v1318_v17 = vld [vmem:[#allocation2 + $0xa0] sm:$0xff]  ;;  %v1319_v20 = vld [vmem:[#allocation2 + $0xa8] sm:$0xff] }
  0x15   :  { %v1345_v18 = vld [vmem:[#allocation7 + $0x38] sm:$0xff]  ;;  %v1344_v21 = vld [vmem:[#allocation7 + $0x30] sm:$0xff]  ;;  %v1343_v22 = vld [vmem:[#allocation7 + $0x28] sm:$0xff] }
  0x16   :  { %725 = vmatpush.bf16.msra.mxu1 %v1345_v18  ;;  %1354 = vmatpush.bf16.msra.mxu3 %v1345_v18  ;;  %v1342_v23 = vld [vmem:[#allocation7 + $0x20] sm:$0xff]  ;;  %v1341_v24 = vld [vmem:[#allocation7 + $0x18] sm:$0xff]  ;;  %v1304_v25 = vld [vmem:[#allocation2 + $0x30] sm:$0xff] }
  0x17   :  { %394 = vmatpush.bf16.msra.mxu0 %v1335_v2  ;;  %1348 = vmatpush.bf16.msra.mxu2 %v1335_v2  ;;  %v1320_v26 = vld [vmem:[#allocation2 + $0xb0] sm:$0xff]  ;;  %v1339_v28 = vld [vmem:[#allocation7 + $0x8] sm:$0xff]  ;;  %v1338_v29 = vld [vmem:[#allocation7] sm:$0xff] }
  0x18   :  { %v1340_v27 = vld [vmem:[#allocation7 + $0x10] sm:$0xff]  ;;  %v1305_v30 = vld [vmem:[#allocation2 + $0x38] sm:$0xff]  ;;  %v1306_v32 = vld [vmem:[#allocation2 + $0x40] sm:$0xff] }
  0x19   :  { %v1321_v31 = vld [vmem:[#allocation2 + $0xb8] sm:$0xff]  ;;  %v1322_v33 = vld [vmem:[#allocation2 + $0xc0] sm:$0xff]  ;;  %v1307_v46 = vld [vmem:[#allocation2 + $0x48] sm:$0xff] }
  0x1a   :  { %726 = vmatpush.bf16.msra.mxu1 %v1344_v21  ;;  %1355 = vmatpush.bf16.msra.mxu3 %v1344_v21  ;;  %v1748_v35 = vld [vmem:[%s1984_s2] ss:$0 sm:$0xff]  ;;  %v1323_v47 = vld [vmem:[#allocation2 + $0xc8] sm:$0xff]  ;;  %v1308_v62 = vld [vmem:[#allocation2 + $0x50] sm:$0xff] }
  0x1b   :  { %395 = vmatpush.bf16.msra.mxu0 %v1334_v3  ;;  %1349 = vmatpush.bf16.msra.mxu2 %v1334_v3  ;;  %v1324_v63 = vld [vmem:[#allocation2 + $0xd0] sm:$0xff] }
  0x1e   :  { %727 = vmatpush.bf16.msra.mxu1 %v1343_v22  ;;  %1356 = vmatpush.bf16.msra.mxu3 %v1343_v22 }
  0x1f   :  { %396 = vmatpush.bf16.msra.mxu0 %v1333_v4  ;;  %1350 = vmatpush.bf16.msra.mxu2 %v1333_v4 }
  0x22   :  { %728 = vmatpush.bf16.msra.mxu1 %v1342_v23  ;;  %1357 = vmatpush.bf16.msra.mxu3 %v1342_v23 }
  0x23   :  { %397 = vmatpush.bf16.msra.mxu0 %v1332_v5  ;;  %1351 = vmatpush.bf16.msra.mxu2 %v1332_v5 }
  0x26   :  { %729 = vmatpush.bf16.msra.mxu1 %v1341_v24  ;;  %1358 = vmatpush.bf16.msra.mxu3 %v1341_v24 }
  0x27   :  { %398 = vmatpush.bf16.msra.mxu0 %v1331_v6  ;;  %1352 = vmatpush.bf16.msra.mxu2 %v1331_v6 }
  0x2a   :  { %730 = vmatpush.bf16.msra.mxu1 %v1340_v27  ;;  %1359 = vmatpush.bf16.msra.mxu3 %v1340_v27 }
  0x2b   :  { %399 = vmatpush.bf16.msra.mxu0 %v1330_v7  ;;  %1353 = vmatpush.bf16.msra.mxu2 %v1330_v7 }
  0x2e   :  { %400 = vmatmul.bf16.vlgmr.msra.gmra.mxu0 %v1298_v8  ;;  %480 = vmatmul.bf16.vlgmr.msra.gmra.mxu2 %v1314_v9 }
  0x2f   :  { %731 = vmatpush.bf16.msra.mxu1 %v1339_v28  ;;  %1360 = vmatpush.bf16.msra.mxu3 %v1339_v28 }
  0x33   :  { %732 = vmatpush.bf16.msra.mxu1 %v1338_v29  ;;  %1361 = vmatpush.bf16.msra.mxu3 %v1338_v29 }
  0x3e   :  { %405 = vmatmul.bf16.gmra.mxu0 %v1299_v10  ;;  %485 = vmatmul.bf16.gmra.mxu2 %v1315_v11 }
  0x4e   :  { %410 = vmatmul.bf16.gmra.mxu0 %v1300_v12  ;;  %490 = vmatmul.bf16.gmra.mxu2 %v1316_v13 }
  0x5e   :  { %415 = vmatmul.bf16.gmra.mxu0 %v1301_v14  ;;  %495 = vmatmul.bf16.gmra.mxu2 %v1317_v15  ;;  %v1309_v14 = vld [vmem:[#allocation2 + $0x58] sm:$0xff] }
  0x5f   :  { %v1325_v15 = vld [vmem:[#allocation2 + $0xd8] sm:$0xff] }
  0x6e   :  { %420 = vmatmul.bf16.gmra.mxu0 %v1302_v16  ;;  %500 = vmatmul.bf16.gmra.mxu2 %v1318_v17 }
  0x7e   :  { %425 = vmatmul.bf16.gmra.mxu0 %v1303_v19  ;;  %505 = vmatmul.bf16.gmra.mxu2 %v1319_v20 }
  0x8e   :  { %430 = vmatmul.bf16.gmra.mxu0 %v1304_v25  ;;  %510 = vmatmul.bf16.gmra.mxu2 %v1320_v26 }
  0x9e   :  { %435 = vmatmul.bf16.gmra.mxu0 %v1305_v30  ;;  %515 = vmatmul.bf16.gmra.mxu2 %v1321_v31  ;;  %v1310_v30 = vld [vmem:[#allocation2 + $0x60] sm:$0xff] }
  0x9f   :  { %v1326_v31 = vld [vmem:[#allocation2 + $0xe0] sm:$0xff] }
  0xab   :  { %v401_v34 = vpop.f32.mrf.mxu0 }
  0xac   :  { %v402_v36 = vadd.f32 %v1748_v35, %v401_v34 }
  0xae   :  { %440 = vmatmul.bf16.gmra.mxu0 %v1306_v32  ;;  %520 = vmatmul.bf16.gmra.mxu2 %v1322_v33  ;;  %v561_v39 = vmax.f32 %v402_v36, 0.0 }
  0xb1   :  { %v481_v37 = vpop.f32.mrf.mxu2 }
  0xb2   :  { %v482_v42 = vadd.f32 %v1748_v35, %v481_v37 }
  0xb3   :  { %v403_v38 = vpop.f32.mrf.mxu0 }
  0xb4   :  { %v404_v40 = vadd.f32 %v1748_v35, %v403_v38  ;;  %v593_v49 = vmax.f32 %v482_v42, 0.0 }
  0xb6   :  { %v562_v41 = vmax.f32 %v404_v40, 0.0 }
  0xb8   :  { %v625_v43 = vpack.c.bf16 %v562_v41, %v561_v39 }
  0xb9   :  { %v483_v44 = vpop.f32.mrf.mxu2 }
  0xba   :  { %v484_v45 = vadd.f32 %v1748_v35, %v483_v44  ;;  %733 = vmatmul.bf16.vlgmr.msra.gmra.mxu1 %v625_v43 }
  0xbb   :  { %v406_v48 = vpop.f32.mrf.mxu0 }
  0xbc   :  { %v594_v50 = vmax.f32 %v484_v45, 0.0  ;;  %v407_v52 = vadd.f32 %v1748_v35, %v406_v48  ;;  %v1327_v48 = vld [vmem:[#allocation2 + $0xe8] sm:$0xff] }
  0xbe   :  { %445 = vmatmul.bf16.gmra.mxu0 %v1307_v46  ;;  %525 = vmatmul.bf16.gmra.mxu2 %v1323_v47  ;;  %v641_v51 = vpack.c.bf16 %v594_v50, %v593_v49  ;;  %v563_v55 = vmax.f32 %v407_v52, 0.0  ;;  %v1311_v47 = vld [vmem:[#allocation2 + $0x68] sm:$0xff] }
  0xc0   :  { %813 = vmatmul.bf16.vlgmr.msra.gmra.mxu3 %v641_v51 }
  0xc1   :  { %v486_v53 = vpop.f32.mrf.mxu2 }
  0xc2   :  { %v487_v58 = vadd.f32 %v1748_v35, %v486_v53 }
  0xc3   :  { %v408_v54 = vpop.f32.mrf.mxu0 }
  0xc4   :  { %v409_v56 = vadd.f32 %v1748_v35, %v408_v54  ;;  %v595_v1 = vmax.f32 %v487_v58, 0.0 }
  0xc6   :  { %v564_v57 = vmax.f32 %v409_v56, 0.0 }
  0xc8   :  { %v626_v59 = vpack.c.bf16 %v564_v57, %v563_v55 }
  0xc9   :  { %v488_v60 = vpop.f32.mrf.mxu2 }
  0xca   :  { %v489_v61 = vadd.f32 %v1748_v35, %v488_v60  ;;  %738 = vmatmul.bf16.gmra.mxu1 %v626_v59 }
  0xcb   :  { %v411_v0 = vpop.f32.mrf.mxu0 }
  0xcc   :  { %v596_v2 = vmax.f32 %v489_v61, 0.0  ;;  %v412_v4 = vadd.f32 %v1748_v35, %v411_v0  ;;  %v1328_v0 = vld [vmem:[#allocation2 + $0xf0] sm:$0xff] }
  0xce   :  { %450 = vmatmul.bf16.gmra.mxu0 %v1308_v62  ;;  %530 = vmatmul.bf16.gmra.mxu2 %v1324_v63  ;;  %v642_v3 = vpack.c.bf16 %v596_v2, %v595_v1  ;;  %v565_v7 = vmax.f32 %v412_v4, 0.0  ;;  %v1312_v63 = vld [vmem:[#allocation2 + $0x70] sm:$0xff] }
  0xd0   :  { %818 = vmatmul.bf16.gmra.mxu3 %v642_v3 }
  0xd1   :  { %v491_v5 = vpop.f32.mrf.mxu2 }
  0xd2   :  { %v492_v10 = vadd.f32 %v1748_v35, %v491_v5 }
  0xd3   :  { %v413_v6 = vpop.f32.mrf.mxu0 }
  0xd4   :  { %v414_v8 = vadd.f32 %v1748_v35, %v413_v6  ;;  %v597_v17 = vmax.f32 %v492_v10, 0.0 }
  0xd6   :  { %v566_v9 = vmax.f32 %v414_v8, 0.0 }
  0xd8   :  { %v627_v11 = vpack.c.bf16 %v566_v9, %v565_v7 }
  0xd9   :  { %v493_v12 = vpop.f32.mrf.mxu2 }
  0xda   :  { %v494_v13 = vadd.f32 %v1748_v35, %v493_v12  ;;  %743 = vmatmul.bf16.gmra.mxu1 %v627_v11 }
  0xdb   :  { %v416_v16 = vpop.f32.mrf.mxu0 }
  0xdc   :  { %v598_v18 = vmax.f32 %v494_v13, 0.0  ;;  %v417_v20 = vadd.f32 %v1748_v35, %v416_v16  ;;  %v1329_v16 = vld [vmem:[#allocation2 + $0xf8] sm:$0xff] }
  0xde   :  { %455 = vmatmul.bf16.gmra.mxu0 %v1309_v14  ;;  %535 = vmatmul.bf16.gmra.mxu2 %v1325_v15  ;;  %v643_v19 = vpack.c.bf16 %v598_v18, %v597_v17  ;;  %v567_v23 = vmax.f32 %v417_v20, 0.0  ;;  %v1313_v15 = vld [vmem:[#allocation2 + $0x78] sm:$0xff] }
  0xe0   :  { %823 = vmatmul.bf16.gmra.mxu3 %v643_v19 }
  0xe1   :  { %v496_v21 = vpop.f32.mrf.mxu2 }
  0xe2   :  { %v497_v26 = vadd.f32 %v1748_v35, %v496_v21 }
  0xe3   :  { %v418_v22 = vpop.f32.mrf.mxu0 }
  0xe4   :  { %v419_v24 = vadd.f32 %v1748_v35, %v418_v22  ;;  %v599_v33 = vmax.f32 %v497_v26, 0.0 }
  0xe6   :  { %v568_v25 = vmax.f32 %v419_v24, 0.0 }
  0xe8   :  { %v628_v27 = vpack.c.bf16 %v568_v25, %v567_v23 }
  0xe9   :  { %v498_v28 = vpop.f32.mrf.mxu2 }
  0xea   :  { %v499_v29 = vadd.f32 %v1748_v35, %v498_v28  ;;  %748 = vmatmul.bf16.gmra.mxu1 %v628_v27 }
  0xeb   :  { %v421_v32 = vpop.f32.mrf.mxu0 }
  0xec   :  { %v600_v34 = vmax.f32 %v499_v29, 0.0  ;;  %v422_v37 = vadd.f32 %v1748_v35, %v421_v32 }
  0xee   :  { %460 = vmatmul.bf16.gmra.mxu0 %v1310_v30  ;;  %540 = vmatmul.bf16.gmra.mxu2 %v1326_v31  ;;  %v644_v36 = vpack.c.bf16 %v600_v34, %v599_v33  ;;  %v569_v40 = vmax.f32 %v422_v37, 0.0 }
  0xf0   :  { %828 = vmatmul.bf16.gmra.mxu3 %v644_v36 }
  0xf1   :  { %v501_v38 = vpop.f32.mrf.mxu2 }
  0xf2   :  { %v502_v43 = vadd.f32 %v1748_v35, %v501_v38 }
  0xf3   :  { %v423_v39 = vpop.f32.mrf.mxu0 }
  0xf4   :  { %v424_v41 = vadd.f32 %v1748_v35, %v423_v39  ;;  %v601_v50 = vmax.f32 %v502_v43, 0.0 }
  0xf6   :  { %v570_v42 = vmax.f32 %v424_v41, 0.0 }
  0xf8   :  { %v629_v44 = vpack.c.bf16 %v570_v42, %v569_v40 }
  0xf9   :  { %v503_v45 = vpop.f32.mrf.mxu2 }
  0xfa   :  { %v504_v46 = vadd.f32 %v1748_v35, %v503_v45  ;;  %753 = vmatmul.bf16.gmra.mxu1 %v629_v44 }
  0xfb   :  { %v426_v49 = vpop.f32.mrf.mxu0 }
  0xfc   :  { %v602_v51 = vmax.f32 %v504_v46, 0.0  ;;  %v427_v53 = vadd.f32 %v1748_v35, %v426_v49 }
  0xfe   :  { %465 = vmatmul.bf16.gmra.mxu0 %v1311_v47  ;;  %545 = vmatmul.bf16.gmra.mxu2 %v1327_v48  ;;  %v645_v52 = vpack.c.bf16 %v602_v51, %v601_v50  ;;  %v571_v56 = vmax.f32 %v427_v53, 0.0 }
 0x100   :  { %833 = vmatmul.bf16.gmra.mxu3 %v645_v52 }
 0x101   :  { %v506_v54 = vpop.f32.mrf.mxu2 }
 0x102   :  { %v507_v59 = vadd.f32 %v1748_v35, %v506_v54 }
 0x103   :  { %v428_v55 = vpop.f32.mrf.mxu0 }
 0x104   :  { %v429_v57 = vadd.f32 %v1748_v35, %v428_v55  ;;  %v603_v2 = vmax.f32 %v507_v59, 0.0 }
 0x106   :  { %v572_v58 = vmax.f32 %v429_v57, 0.0 }
 0x108   :  { %v630_v60 = vpack.c.bf16 %v572_v58, %v571_v56 }
 0x109   :  { %v508_v61 = vpop.f32.mrf.mxu2 }
 0x10a   :  { %v509_v62 = vadd.f32 %v1748_v35, %v508_v61  ;;  %758 = vmatmul.bf16.gmra.mxu1 %v630_v60 }
 0x10b   :  { %v431_v1 = vpop.f32.mrf.mxu0 }
 0x10c   :  { %v604_v3 = vmax.f32 %v509_v62, 0.0  ;;  %v432_v5 = vadd.f32 %v1748_v35, %v431_v1 }
 0x10e   :  { %470 = vmatmul.bf16.gmra.mxu0 %v1312_v63  ;;  %550 = vmatmul.bf16.gmra.mxu2 %v1328_v0  ;;  %v646_v4 = vpack.c.bf16 %v604_v3, %v603_v2  ;;  %v573_v8 = vmax.f32 %v432_v5, 0.0 }
 0x110   :  { %838 = vmatmul.bf16.gmra.mxu3 %v646_v4 }
 0x111   :  { %v511_v6 = vpop.f32.mrf.mxu2 }
 0x112   :  { %v512_v11 = vadd.f32 %v1748_v35, %v511_v6 }
 0x113   :  { %v433_v7 = vpop.f32.mrf.mxu0 }
 0x114   :  { %v434_v9 = vadd.f32 %v1748_v35, %v433_v7  ;;  %v605_v18 = vmax.f32 %v512_v11, 0.0 }
 0x116   :  { %v574_v10 = vmax.f32 %v434_v9, 0.0 }
 0x118   :  { %v631_v12 = vpack.c.bf16 %v574_v10, %v573_v8 }
 0x119   :  { %v513_v13 = vpop.f32.mrf.mxu2 }
 0x11a   :  { %v514_v14 = vadd.f32 %v1748_v35, %v513_v13  ;;  %763 = vmatmul.bf16.gmra.mxu1 %v631_v12 }
 0x11b   :  { %v436_v17 = vpop.f32.mrf.mxu0 }
 0x11c   :  { %v606_v19 = vmax.f32 %v514_v14, 0.0  ;;  %v437_v21 = vadd.f32 %v1748_v35, %v436_v17 }
 0x11e   :  { %475 = vmatmul.bf16.gmra.mxu0 %v1313_v15  ;;  %555 = vmatmul.bf16.gmra.mxu2 %v1329_v16  ;;  %v647_v20 = vpack.c.bf16 %v606_v19, %v605_v18  ;;  %v575_v24 = vmax.f32 %v437_v21, 0.0 }
 0x120   :  { %843 = vmatmul.bf16.gmra.mxu3 %v647_v20 }
 0x121   :  { %v516_v22 = vpop.f32.mrf.mxu2 }
 0x122   :  { %v517_v27 = vadd.f32 %v1748_v35, %v516_v22 }
 0x123   :  { %v438_v23 = vpop.f32.mrf.mxu0 }
 0x124   :  { %v439_v25 = vadd.f32 %v1748_v35, %v438_v23  ;;  %v607_v32 = vmax.f32 %v517_v27, 0.0 }
 0x126   :  { %v576_v26 = vmax.f32 %v439_v25, 0.0 }
 0x128   :  { %v632_v28 = vpack.c.bf16 %v576_v26, %v575_v24 }
 0x129   :  { %v518_v29 = vpop.f32.mrf.mxu2 }
 0x12a   :  { %v519_v30 = vadd.f32 %v1748_v35, %v518_v29  ;;  %768 = vmatmul.bf16.gmra.mxu1 %v632_v28 }
 0x12b   :  { %v441_v31 = vpop.f32.mrf.mxu0 }
 0x12c   :  { %v608_v33 = vmax.f32 %v519_v30, 0.0  ;;  %v442_v36 = vadd.f32 %v1748_v35, %v441_v31 }
 0x12e   :  { %v648_v34 = vpack.c.bf16 %v608_v33, %v607_v32  ;;  %v577_v39 = vmax.f32 %v442_v36, 0.0 }
 0x130   :  { %848 = vmatmul.bf16.gmra.mxu3 %v648_v34 }
 0x131   :  { %v521_v37 = vpop.f32.mrf.mxu2 }
 0x132   :  { %v522_v43 = vadd.f32 %v1748_v35, %v521_v37 }
 0x133   :  { %v443_v38 = vpop.f32.mrf.mxu0 }
 0x134   :  { %v444_v40 = vadd.f32 %v1748_v35, %v443_v38  ;;  %v609_v48 = vmax.f32 %v522_v43, 0.0 }
 0x136   :  { %v578_v41 = vmax.f32 %v444_v40, 0.0 }
 0x137   :  { %v1784_v42 = vpop.f32.mrf.mxu1 }
 0x138   :  { %v633_v44 = vpack.c.bf16 %v578_v41, %v577_v39 }
 0x139   :  { %v523_v45 = vpop.f32.mrf.mxu2 }
 0x13a   :  { %v524_v46 = vadd.f32 %v1748_v35, %v523_v45  ;;  %773 = vmatmul.bf16.gmra.mxu1 %v633_v44 }
 0x13b   :  { %v446_v47 = vpop.f32.mrf.mxu0 }
 0x13c   :  { %v610_v49 = vmax.f32 %v524_v46, 0.0  ;;  %v447_v52 = vadd.f32 %v1748_v35, %v446_v47 }
 0x13e   :  { %v649_v50 = vpack.c.bf16 %v610_v49, %v609_v48  ;;  %v579_v56 = vmax.f32 %v447_v52, 0.0 }
 0x13f   :  { %v1788_v51 = vpop.f32.mrf.mxu1 }
 0x140   :  { %853 = vmatmul.bf16.gmra.mxu3 %v649_v50 }
 0x141   :  { %v526_v53 = vpop.f32.mrf.mxu2 }
 0x142   :  { %v527_v60 = vadd.f32 %v1748_v35, %v526_v53 }
 0x143   :  { %v448_v54 = vpop.f32.mrf.mxu0  ;;  %v1791_v55 = vpop.f32.mrf.mxu3 }
 0x144   :  { %v449_v57 = vadd.f32 %v1748_v35, %v448_v54  ;;  %v611_v2 = vmax.f32 %v527_v60, 0.0 }
 0x146   :  { %v580_v58 = vmax.f32 %v449_v57, 0.0 }
 0x147   :  { %v1794_v59 = vpop.f32.mrf.mxu1 }
 0x148   :  { %v634_v61 = vpack.c.bf16 %v580_v58, %v579_v56 }
 0x149   :  { %v528_v62 = vpop.f32.mrf.mxu2 }
 0x14a   :  { %v529_v63 = vadd.f32 %v1748_v35, %v528_v62  ;;  %778 = vmatmul.bf16.gmra.mxu1 %v634_v61 }
 0x14b   :  { %v451_v0 = vpop.f32.mrf.mxu0  ;;  %v1798_v1 = vpop.f32.mrf.mxu3 }
 0x14c   :  { %v612_v3 = vmax.f32 %v529_v63, 0.0  ;;  %v452_v6 = vadd.f32 %v1748_v35, %v451_v0 }
 0x14e   :  { %v650_v4 = vpack.c.bf16 %v612_v3, %v611_v2  ;;  %v581_v10 = vmax.f32 %v452_v6, 0.0 }
 0x14f   :  { %v1800_v5 = vpop.f32.mrf.mxu1 }
 0x150   :  { %858 = vmatmul.bf16.gmra.mxu3 %v650_v4 }
 0x151   :  { %v531_v7 = vpop.f32.mrf.mxu2 }
 0x152   :  { %v532_v14 = vadd.f32 %v1748_v35, %v531_v7 }
 0x153   :  { %v453_v8 = vpop.f32.mrf.mxu0  ;;  %v1803_v9 = vpop.f32.mrf.mxu3 }
 0x154   :  { %v454_v11 = vadd.f32 %v1748_v35, %v453_v8  ;;  %v613_v20 = vmax.f32 %v532_v14, 0.0 }
 0x156   :  { %v582_v12 = vmax.f32 %v454_v11, 0.0 }
 0x157   :  { %v1806_v13 = vpop.f32.mrf.mxu1 }
 0x158   :  { %v635_v15 = vpack.c.bf16 %v582_v12, %v581_v10 }
 0x159   :  { %v533_v16 = vpop.f32.mrf.mxu2 }
 0x15a   :  { %v534_v17 = vadd.f32 %v1748_v35, %v533_v16  ;;  %783 = vmatmul.bf16.gmra.mxu1 %v635_v15 }
 0x15b   :  { %v456_v18 = vpop.f32.mrf.mxu0  ;;  %v1810_v19 = vpop.f32.mrf.mxu3 }
 0x15c   :  { %v614_v21 = vmax.f32 %v534_v17, 0.0  ;;  %v457_v24 = vadd.f32 %v1748_v35, %v456_v18 }
 0x15e   :  { %v651_v22 = vpack.c.bf16 %v614_v21, %v613_v20  ;;  %v583_v28 = vmax.f32 %v457_v24, 0.0 }
 0x15f   :  { %v1812_v23 = vpop.f32.mrf.mxu1 }
 0x160   :  { %863 = vmatmul.bf16.gmra.mxu3 %v651_v22 }
 0x161   :  { %v536_v25 = vpop.f32.mrf.mxu2 }
 0x162   :  { %v537_v32 = vadd.f32 %v1748_v35, %v536_v25 }
 0x163   :  { %v458_v26 = vpop.f32.mrf.mxu0  ;;  %v1815_v27 = vpop.f32.mrf.mxu3 }
 0x164   :  { %v459_v29 = vadd.f32 %v1748_v35, %v458_v26  ;;  %v615_v39 = vmax.f32 %v537_v32, 0.0 }
 0x166   :  { %v584_v30 = vmax.f32 %v459_v29, 0.0 }
 0x167   :  { %v1818_v31 = vpop.f32.mrf.mxu1 }
 0x168   :  { %v636_v33 = vpack.c.bf16 %v584_v30, %v583_v28 }
 0x169   :  { %v538_v34 = vpop.f32.mrf.mxu2 }
 0x16a   :  { %v539_v36 = vadd.f32 %v1748_v35, %v538_v34  ;;  %788 = vmatmul.bf16.gmra.mxu1 %v636_v33 }
 0x16b   :  { %v461_v37 = vpop.f32.mrf.mxu0  ;;  %v1822_v38 = vpop.f32.mrf.mxu3 }
 0x16c   :  { %v616_v40 = vmax.f32 %v539_v36, 0.0  ;;  %v462_v44 = vadd.f32 %v1748_v35, %v461_v37 }
 0x16e   :  { %v652_v41 = vpack.c.bf16 %v616_v40, %v615_v39  ;;  %v585_v48 = vmax.f32 %v462_v44, 0.0 }
 0x16f   :  { %v1824_v43 = vpop.f32.mrf.mxu1 }
 0x170   :  { %868 = vmatmul.bf16.gmra.mxu3 %v652_v41 }
 0x171   :  { %v541_v45 = vpop.f32.mrf.mxu2 }
 0x172   :  { %v542_v53 = vadd.f32 %v1748_v35, %v541_v45 }
 0x173   :  { %v463_v46 = vpop.f32.mrf.mxu0  ;;  %v1827_v47 = vpop.f32.mrf.mxu3 }
 0x174   :  { %v464_v49 = vadd.f32 %v1748_v35, %v463_v46  ;;  %v617_v61 = vmax.f32 %v542_v53, 0.0 }
 0x176   :  { %v586_v50 = vmax.f32 %v464_v49, 0.0 }
 0x177   :  { %v1830_v52 = vpop.f32.mrf.mxu1 }
 0x178   :  { %v637_v54 = vpack.c.bf16 %v586_v50, %v585_v48 }
 0x179   :  { %v543_v56 = vpop.f32.mrf.mxu2 }
 0x17a   :  { %v544_v57 = vadd.f32 %v1748_v35, %v543_v56  ;;  %793 = vmatmul.bf16.gmra.mxu1 %v637_v54 }
 0x17b   :  { %v466_v58 = vpop.f32.mrf.mxu0  ;;  %v1834_v60 = vpop.f32.mrf.mxu3 }
 0x17c   :  { %v618_v62 = vmax.f32 %v544_v57, 0.0  ;;  %v467_v2 = vadd.f32 %v1748_v35, %v466_v58 }
 0x17e   :  { %v653_v63 = vpack.c.bf16 %v618_v62, %v617_v61  ;;  %v587_v7 = vmax.f32 %v467_v2, 0.0 }
 0x17f   :  { %v1836_v0 = vpop.f32.mrf.mxu1 }
 0x180   :  { %873 = vmatmul.bf16.gmra.mxu3 %v653_v63 }
 0x181   :  { %v546_v3 = vpop.f32.mrf.mxu2 }
 0x182   :  { %v547_v12 = vadd.f32 %v1748_v35, %v546_v3 }
 0x183   :  { %v468_v4 = vpop.f32.mrf.mxu0  ;;  %v1839_v6 = vpop.f32.mrf.mxu3 }
 0x184   :  { %v469_v8 = vadd.f32 %v1748_v35, %v468_v4  ;;  %v619_v20 = vmax.f32 %v547_v12, 0.0 }
 0x186   :  { %v588_v10 = vmax.f32 %v469_v8, 0.0 }
 0x187   :  { %v1842_v11 = vpop.f32.mrf.mxu1 }
 0x188   :  { %v638_v14 = vpack.c.bf16 %v588_v10, %v587_v7 }
 0x189   :  { %v548_v15 = vpop.f32.mrf.mxu2 }
 0x18a   :  { %v549_v16 = vadd.f32 %v1748_v35, %v548_v15  ;;  %798 = vmatmul.bf16.gmra.mxu1 %v638_v14 }
 0x18b   :  { %v471_v17 = vpop.f32.mrf.mxu0  ;;  %v1846_v18 = vpop.f32.mrf.mxu3 }
 0x18c   :  { %v620_v21 = vmax.f32 %v549_v16, 0.0  ;;  %v472_v25 = vadd.f32 %v1748_v35, %v471_v17  ;;  %v1879_v16 = vld [vmem:[%s1986_s4] ss:$0 sm:$0xff]  ;;  %s1703_s4 = smov [#allocation8]  }
 0x18d   :  { %s1090_s10 = sshll.u32 %s1703_s4, 4  ;;  %s1091_s10 = int_to_ptr.vmem [resolvable:$true] %s1090_s10 }
 0x18e   :  { %v654_v22 = vpack.c.bf16 %v620_v21, %v619_v20  ;;  %v589_v30 = vmax.f32 %v472_v25, 0.0 }
 0x18f   :  { %v1848_v24 = vpop.f32.mrf.mxu1 }
 0x190   :  { %878 = vmatmul.bf16.gmra.mxu3 %v654_v22 }
 0x191   :  { %v551_v26 = vpop.f32.mrf.mxu2 }
 0x192   :  { %v552_v36 = vadd.f32 %v1748_v35, %v551_v26  ;;  %v737_v26 = vadd.f32 %v1879_v16, %v1788_v51 }
 0x193   :  { %v473_v28 = vpop.f32.mrf.mxu0  ;;  %v1851_v29 = vpop.f32.mrf.mxu3 }
 0x194   :  { %v474_v32 = vadd.f32 %v1748_v35, %v473_v28  ;;  %v621_v45 = vmax.f32 %v552_v36, 0.0 }
 0x196   :  { %v590_v33 = vmax.f32 %v474_v32, 0.0 }
 0x197   :  { %v1854_v34 = vpop.f32.mrf.mxu1 }
 0x198   :  { %v639_v37 = vpack.c.bf16 %v590_v33, %v589_v30  ;;  %v815_v33 = vadd.f32 %v1879_v16, %v1791_v55 }
 0x199   :  { %v553_v39 = vpop.f32.mrf.mxu2 }
 0x19a   :  { %v554_v40 = vadd.f32 %v1748_v35, %v553_v39  ;;  %803 = vmatmul.bf16.gmra.mxu1 %v639_v37  ;;  %v740_v39 = vadd.f32 %v1879_v16, %v1794_v59 }
 0x19b   :  { %v476_v41 = vpop.f32.mrf.mxu0  ;;  %v1858_v44 = vpop.f32.mrf.mxu3 }
 0x19c   :  { %v622_v46 = vmax.f32 %v554_v40, 0.0  ;;  %v477_v50 = vadd.f32 %v1748_v35, %v476_v41 }
 0x19e   :  { %v655_v48 = vpack.c.bf16 %v622_v46, %v621_v45  ;;  %v591_v57 = vmax.f32 %v477_v50, 0.0  ;;  %v817_v45 = vadd.f32 %v1879_v16, %v1798_v1  ;;  %v742_v50 = vadd.f32 %v1879_v16, %v1800_v5 }
 0x19f   :  { %v1860_v49 = vpop.f32.mrf.mxu1 }
 0x1a0   :  { %883 = vmatmul.bf16.gmra.mxu3 %v655_v48 }
 0x1a1   :  { %v556_v53 = vpop.f32.mrf.mxu2 }
 0x1a2   :  { %v557_v63 = vadd.f32 %v1748_v35, %v556_v53 }
 0x1a3   :  { %v478_v54 = vpop.f32.mrf.mxu0  ;;  %v1863_v56 = vpop.f32.mrf.mxu3 }
 0x1a4   :  { %v479_v58 = vadd.f32 %v1748_v35, %v478_v54  ;;  %v623_v8 = vmax.f32 %v557_v63, 0.0  ;;  %v745_v63 = vadd.f32 %v1879_v16, %v1806_v13 }
 0x1a6   :  { %v592_v61 = vmax.f32 %v479_v58, 0.0 }
 0x1a7   :  { %v1866_v62 = vpop.f32.mrf.mxu1 }
 0x1a8   :  { %v640_v2 = vpack.c.bf16 %v592_v61, %v591_v57  ;;  %v820_v57 = vadd.f32 %v1879_v16, %v1803_v9 }
 0x1a9   :  { %v558_v3 = vpop.f32.mrf.mxu2 }
 0x1aa   :  { %v559_v4 = vadd.f32 %v1748_v35, %v558_v3  ;;  %808 = vmatmul.bf16.gmra.mxu1 %v640_v2  ;;  %v735_v35 = vadd.f32 %v1879_v16, %v1784_v42 }
 0x1ab   :  { %v1870_v7 = vpop.f32.mrf.mxu3 }
 0x1ac   :  { %v624_v10 = vmax.f32 %v559_v4, 0.0  ;;  %v822_v4 = vadd.f32 %v1879_v16, %v1810_v19 }
 0x1ae   :  { %v656_v12 = vpack.c.bf16 %v624_v10, %v623_v8 }
 0x1af   :  { %v1872_v14 = vpop.f32.mrf.mxu1 }
 0x1b0   :  { %888 = vmatmul.bf16.gmra.mxu3 %v656_v12  ;;  %v747_v12 = vadd.f32 %v1879_v16, %v1812_v23 }
 0x1b3   :  { %v1874_v15 = vpop.f32.mrf.mxu3 }
 0x1b7   :  { %v774_v17 = vpop.f32.mrf.mxu1 }
 0x1b8   :  { %v775_v20 = vadd.f32 %v1879_v16, %v774_v17 }
 0x1ba   :  { %v1370_v21 = vpack.i.bf16 %v775_v20, %v735_v35  ;;  %v825_v20 = vadd.f32 %v1879_v16, %v1815_v27 }
 0x1bb   :  { %v1884_v22 = vpop.f32.mrf.mxu3 }
 0x1bc   :  { %1371 = vxpose.xlu0.b32.start [1/16] %v1370_v21, 128 }
 0x1bf   :  { %v776_v25 = vpop.f32.mrf.mxu1 }
 0x1c0   :  { %v777_v28 = vadd.f32 %v1879_v16, %v776_v25 }
 0x1c2   :  { %v1372_v30 = vpack.i.bf16 %v777_v28, %v737_v26  ;;  %v750_v26 = vadd.f32 %v1879_v16, %v1818_v31 }
 0x1c3   :  { %v854_v32 = vpop.f32.mrf.mxu3 }
 0x1c4   :  { %v855_v36 = vadd.f32 %v1879_v16, %v854_v32  ;;  %1373 = vxpose.xlu0.b32.cont [2/16] %v1372_v30, 128  ;;  %v827_v32 = vadd.f32 %v1879_v16, %v1822_v38 }
 0x1c6   :  { %v1482_v42 = vpack.i.bf16 %v855_v36, %v815_v33 }
 0x1c7   :  { %v779_v37 = vpop.f32.mrf.mxu1 }
 0x1c8   :  { %v780_v40 = vadd.f32 %v1879_v16, %v779_v37  ;;  %1483 = vxpose.xlu1.b32.start [1/16] %v1482_v42, 128  ;;  %v752_v42 = vadd.f32 %v1879_v16, %v1824_v43 }
 0x1ca   :  { %v1374_v41 = vpack.i.bf16 %v780_v40, %v740_v39  ;;  %v830_v40 = vadd.f32 %v1879_v16, %v1827_v47 }
 0x1cb   :  { %v856_v51 = vpop.f32.mrf.mxu3 }
 0x1cc   :  { %v857_v46 = vadd.f32 %v1879_v16, %v856_v51  ;;  %1375 = vxpose.xlu0.b32.cont [3/16] %v1374_v41, 128 }
 0x1ce   :  { %v1484_v55 = vpack.i.bf16 %v857_v46, %v817_v45  ;;  %v755_v45 = vadd.f32 %v1879_v16, %v1830_v52 }
 0x1cf   :  { %v781_v48 = vpop.f32.mrf.mxu1 }
 0x1d0   :  { %v782_v53 = vadd.f32 %v1879_v16, %v781_v48  ;;  %1485 = vxpose.xlu1.b32.cont [2/16] %v1484_v55, 128  ;;  %v832_v48 = vadd.f32 %v1879_v16, %v1834_v60 }
 0x1d2   :  { %v1376_v59 = vpack.i.bf16 %v782_v53, %v742_v50 }
 0x1d3   :  { %v859_v54 = vpop.f32.mrf.mxu3 }
 0x1d4   :  { %v860_v58 = vadd.f32 %v1879_v16, %v859_v54  ;;  %1377 = vxpose.xlu0.b32.cont [4/16] %v1376_v59, 128  ;;  %v757_v59 = vadd.f32 %v1879_v16, %v1836_v0 }
 0x1d6   :  { %v1486_v1 = vpack.i.bf16 %v860_v58, %v820_v57  ;;  %v835_v58 = vadd.f32 %v1879_v16, %v1839_v6 }
 0x1d7   :  { %v784_v61 = vpop.f32.mrf.mxu1 }
 0x1d8   :  { %v785_v2 = vadd.f32 %v1879_v16, %v784_v61  ;;  %1487 = vxpose.xlu1.b32.cont [3/16] %v1486_v1, 128 }
 0x1da   :  { %v1378_v5 = vpack.i.bf16 %v785_v2, %v745_v63  ;;  %v760_v63 = vadd.f32 %v1879_v16, %v1842_v11 }
 0x1db   :  { %v861_v3 = vpop.f32.mrf.mxu3 }
 0x1dc   :  { %v862_v8 = vadd.f32 %v1879_v16, %v861_v3  ;;  %1379 = vxpose.xlu0.b32.cont [5/16] %v1378_v5, 128  ;;  %v837_v3 = vadd.f32 %v1879_v16, %v1846_v18 }
 0x1de   :  { %v1488_v9 = vpack.i.bf16 %v862_v8, %v822_v4 }
 0x1df   :  { %v786_v10 = vpop.f32.mrf.mxu1 }
 0x1e0   :  { %v787_v17 = vadd.f32 %v1879_v16, %v786_v10  ;;  %1489 = vxpose.xlu1.b32.cont [4/16] %v1488_v9, 128  ;;  %v762_v9 = vadd.f32 %v1879_v16, %v1848_v24 }
 0x1e2   :  { %v1380_v13 = vpack.i.bf16 %v787_v17, %v747_v12  ;;  %v840_v17 = vadd.f32 %v1879_v16, %v1851_v29 }
 0x1e3   :  { %v864_v35 = vpop.f32.mrf.mxu3 }
 0x1e4   :  { %v865_v21 = vadd.f32 %v1879_v16, %v864_v35  ;;  %1381 = vxpose.xlu0.b32.cont [6/16] %v1380_v13, 128 }
 0x1e6   :  { %v1490_v19 = vpack.i.bf16 %v865_v21, %v825_v20  ;;  %v765_v20 = vadd.f32 %v1879_v16, %v1854_v34 }
 0x1e7   :  { %v789_v25 = vpop.f32.mrf.mxu1 }
 0x1e8   :  { %v790_v28 = vadd.f32 %v1879_v16, %v789_v25  ;;  %1491 = vxpose.xlu1.b32.cont [5/16] %v1490_v19, 128  ;;  %v842_v25 = vadd.f32 %v1879_v16, %v1858_v44 }
 0x1ea   :  { %v1382_v23 = vpack.i.bf16 %v790_v28, %v750_v26 }
 0x1eb   :  { %v866_v30 = vpop.f32.mrf.mxu3 }
 0x1ec   :  { %v867_v33 = vadd.f32 %v1879_v16, %v866_v30  ;;  %1383 = vxpose.xlu0.b32.cont [7/16] %v1382_v23, 128  ;;  %v767_v23 = vadd.f32 %v1879_v16, %v1860_v49 }
 0x1ee   :  { %v1492_v27 = vpack.i.bf16 %v867_v33, %v827_v32  ;;  %v845_v33 = vadd.f32 %v1879_v16, %v1863_v56 }
 0x1ef   :  { %v791_v36 = vpop.f32.mrf.mxu1 }
 0x1f0   :  { %v792_v37 = vadd.f32 %v1879_v16, %v791_v36  ;;  %1493 = vxpose.xlu1.b32.cont [6/16] %v1492_v27, 128 }
 0x1f2   :  { %v1384_v31 = vpack.i.bf16 %v792_v37, %v752_v42  ;;  %v770_v42 = vadd.f32 %v1879_v16, %v1866_v62 }
 0x1f3   :  { %v869_v39 = vpop.f32.mrf.mxu3 }
 0x1f4   :  { %v870_v41 = vadd.f32 %v1879_v16, %v869_v39  ;;  %1385 = vxpose.xlu0.b32.cont [8/16] %v1384_v31, 128  ;;  %v847_v39 = vadd.f32 %v1879_v16, %v1870_v7 }
 0x1f6   :  { %v1494_v38 = vpack.i.bf16 %v870_v41, %v830_v40 }
 0x1f7   :  { %v794_v51 = vpop.f32.mrf.mxu1 }
 0x1f8   :  { %v795_v46 = vadd.f32 %v1879_v16, %v794_v51  ;;  %1495 = vxpose.xlu1.b32.cont [7/16] %v1494_v38, 128  ;;  %v772_v38 = vadd.f32 %v1879_v16, %v1872_v14 }
 0x1fa   :  { %v1386_v43 = vpack.i.bf16 %v795_v46, %v755_v45  ;;  %v850_v46 = vadd.f32 %v1879_v16, %v1874_v15 }
 0x1fb   :  { %v871_v55 = vpop.f32.mrf.mxu3 }
 0x1fc   :  { %v872_v50 = vadd.f32 %v1879_v16, %v871_v55  ;;  %1387 = vxpose.xlu0.b32.cont [9/16] %v1386_v43, 128 }
 0x1fe   :  { %v1496_v47 = vpack.i.bf16 %v872_v50, %v832_v48  ;;  %v852_v48 = vadd.f32 %v1879_v16, %v1884_v22 }
 0x1ff   :  { %v796_v53 = vpop.f32.mrf.mxu1 }
 0x200   :  { %v797_v54 = vadd.f32 %v1879_v16, %v796_v53  ;;  %1497 = vxpose.xlu1.b32.cont [8/16] %v1496_v47, 128 }
 0x202   :  { %v1388_v52 = vpack.i.bf16 %v797_v54, %v757_v59 }
 0x203   :  { %v874_v57 = vpop.f32.mrf.mxu3 }
 0x204   :  { %v875_v1 = vadd.f32 %v1879_v16, %v874_v57  ;;  %1389 = vxpose.xlu0.b32.cont [10/16] %v1388_v52, 128 }
 0x206   :  { %v1498_v60 = vpack.i.bf16 %v875_v1, %v835_v58 }
 0x207   :  { %v799_v61 = vpop.f32.mrf.mxu1 }
 0x208   :  { %v800_v2 = vadd.f32 %v1879_v16, %v799_v61  ;;  %1499 = vxpose.xlu1.b32.cont [9/16] %v1498_v60, 128 }
 0x20a   :  { %v1390_v0 = vpack.i.bf16 %v800_v2, %v760_v63 }
 0x20b   :  { %v876_v5 = vpop.f32.mrf.mxu3 }
 0x20c   :  { %v877_v4 = vadd.f32 %v1879_v16, %v876_v5  ;;  %1391 = vxpose.xlu0.b32.cont [11/16] %v1390_v0, 128 }
 0x20e   :  { %v1500_v6 = vpack.i.bf16 %v877_v4, %v837_v3 }
 0x20f   :  { %v801_v8 = vpop.f32.mrf.mxu1 }
 0x210   :  { %v802_v10 = vadd.f32 %v1879_v16, %v801_v8  ;;  %1501 = vxpose.xlu1.b32.cont [10/16] %v1500_v6, 128 }
 0x212   :  { %v1392_v11 = vpack.i.bf16 %v802_v10, %v762_v9 }
 0x213   :  { %v879_v12 = vpop.f32.mrf.mxu3 }
 0x214   :  { %v880_v13 = vadd.f32 %v1879_v16, %v879_v12  ;;  %1393 = vxpose.xlu0.b32.cont [12/16] %v1392_v11, 128 }
 0x216   :  { %v1502_v18 = vpack.i.bf16 %v880_v13, %v840_v17 }
 0x217   :  { %v804_v35 = vpop.f32.mrf.mxu1 }
 0x218   :  { %v805_v21 = vadd.f32 %v1879_v16, %v804_v35  ;;  %1503 = vxpose.xlu1.b32.cont [11/16] %v1502_v18, 128 }
 0x21a   :  { %v1394_v24 = vpack.i.bf16 %v805_v21, %v765_v20 }
 0x21b   :  { %v881_v19 = vpop.f32.mrf.mxu3 }
 0x21c   :  { %v882_v26 = vadd.f32 %v1879_v16, %v881_v19  ;;  %1395 = vxpose.xlu0.b32.cont [13/16] %v1394_v24, 128 }
 0x21e   :  { %v1504_v29 = vpack.i.bf16 %v882_v26, %v842_v25 }
 0x21f   :  { %v806_v28 = vpop.f32.mrf.mxu1 }
 0x220   :  { %v807_v30 = vadd.f32 %v1879_v16, %v806_v28  ;;  %1505 = vxpose.xlu1.b32.cont [12/16] %v1504_v29, 128 }
 0x222   :  { %v1396_v34 = vpack.i.bf16 %v807_v30, %v767_v23 }
 0x223   :  { %v884_v32 = vpop.f32.mrf.mxu3 }
 0x224   :  { %v885_v27 = vadd.f32 %v1879_v16, %v884_v32  ;;  %1397 = vxpose.xlu0.b32.cont [14/16] %v1396_v34, 128 }
 0x226   :  { %v1506_v44 = vpack.i.bf16 %v885_v27, %v845_v33 }
 0x227   :  { %v809_v36 = vpop.f32.mrf.mxu1 }
 0x228   :  { %v810_v37 = vadd.f32 %v1879_v16, %v809_v36  ;;  %1507 = vxpose.xlu1.b32.cont [13/16] %v1506_v44, 128 }
 0x22a   :  { %v1398_v49 = vpack.i.bf16 %v810_v37, %v770_v42 }
 0x22b   :  { %v886_v31 = vpop.f32.mrf.mxu3 }
 0x22c   :  { %v887_v40 = vadd.f32 %v1879_v16, %v886_v31  ;;  %1399 = vxpose.xlu0.b32.cont [15/16] %v1398_v49, 128 }
 0x22e   :  { %v1508_v56 = vpack.i.bf16 %v887_v40, %v847_v39 }
 0x22f   :  { %v811_v41 = vpop.f32.mrf.mxu1 }
 0x230   :  { %v812_v51 = vadd.f32 %v1879_v16, %v811_v41  ;;  %1509 = vxpose.xlu1.b32.cont [14/16] %v1508_v56, 128 }
 0x232   :  { %v1400_v62 = vpack.i.bf16 %v812_v51, %v772_v38 }
 0x233   :  { %v889_v45 = vpop.f32.mrf.mxu3 }
 0x234   :  { %v890_v43 = vadd.f32 %v1879_v16, %v889_v45  ;;  %1401 = vxpose.xlu0.b32.end [16/16] %v1400_v62, 128 }
 0x236   :  { %v1510_v7 = vpack.i.bf16 %v890_v43, %v850_v46 }
 0x238   :  { %1511 = vxpose.xlu1.b32.cont [15/16] %v1510_v7, 128 }
 0x23b   :  { %v891_v55 = vpop.f32.mrf.mxu3 }
 0x23c   :  { %v892_v50 = vadd.f32 %v1879_v16, %v891_v55 }
 0x23e   :  { %v1512_v14 = vpack.i.bf16 %v892_v50, %v852_v48 }
 0x240   :  { %1513 = vxpose.xlu1.b32.end [16/16] %v1512_v14, 128 }
 0x260   :  { %v1402_v47 = vpop.trf.xlu0 }
 0x261   :  { %v1406_v53 = vunpack.i.h.bf16 %v1402_v47  ;;  %v1403_v59 = vunpack.i.l.bf16 %v1402_v47 }
 0x263   :  { %v1022_v54 = vpack.c.bf16 %v1406_v53, %v1403_v59 }
 0x265   :  { %1054 = vst [vmem:[#allocation8] sm:$0xff] %v1022_v54 }
 0x268   :  { %v1407_v52 = vpop.trf.xlu0 }
 0x269   :  { %v1411_v15 = vunpack.i.h.bf16 %v1407_v52  ;;  %v1408_v57 = vunpack.i.l.bf16 %v1407_v52 }
 0x26b   :  { %v1024_v58 = vpack.c.bf16 %v1411_v15, %v1408_v57 }
 0x26c   :  { %v1514_v1 = vpop.trf.xlu1 }
 0x26d   :  { %v1518_v60 = vunpack.i.h.bf16 %v1514_v1  ;;  %v1515_v61 = vunpack.i.l.bf16 %v1514_v1  ;;  %1056 = vst [vmem:[#allocation8 + $0x10] sm:$0xff] %v1024_v58 }
 0x26f   :  { %v1023_v63 = vpack.c.bf16 %v1518_v60, %v1515_v61 }
 0x270   :  { %v1412_v2 = vpop.trf.xlu0 }
 0x271   :  { %1055 = vst [vmem:[#allocation8 + $0x8] sm:$0xff] %v1023_v63  ;;  %v1416_v22 = vunpack.i.h.bf16 %v1412_v2  ;;  %v1413_v16 = vunpack.i.l.bf16 %v1412_v2 }
 0x273   :  { %v1026_v0 = vpack.c.bf16 %v1416_v22, %v1413_v16 }
 0x274   :  { %v1519_v5 = vpop.trf.xlu1 }
 0x275   :  { %v1523_v3 = vunpack.i.h.bf16 %v1519_v5  ;;  %v1520_v4 = vunpack.i.l.bf16 %v1519_v5  ;;  %1058 = vst [vmem:[#allocation8 + $0x20] sm:$0xff] %v1026_v0 }
 0x277   :  { %v1025_v6 = vpack.c.bf16 %v1523_v3, %v1520_v4 }
 0x278   :  { %v1417_v8 = vpop.trf.xlu0 }
 0x279   :  { %1057 = vst [vmem:[#allocation8 + $0x18] sm:$0xff] %v1025_v6  ;;  %v1421_v9 = vunpack.i.h.bf16 %v1417_v8  ;;  %v1418_v10 = vunpack.i.l.bf16 %v1417_v8 }
 0x27b   :  { %v1028_v11 = vpack.c.bf16 %v1421_v9, %v1418_v10 }
 0x27c   :  { %v1524_v12 = vpop.trf.xlu1 }
 0x27d   :  { %v1528_v17 = vunpack.i.h.bf16 %v1524_v12  ;;  %v1525_v13 = vunpack.i.l.bf16 %v1524_v12  ;;  %1060 = vst [vmem:[#allocation8 + $0x30] sm:$0xff] %v1028_v11 }
 0x27f   :  { %v1027_v18 = vpack.c.bf16 %v1528_v17, %v1525_v13 }
 0x280   :  { %v1422_v35 = vpop.trf.xlu0 }
 0x281   :  { %1059 = vst [vmem:[#allocation8 + $0x28] sm:$0xff] %v1027_v18  ;;  %v1426_v20 = vunpack.i.h.bf16 %v1422_v35  ;;  %v1423_v21 = vunpack.i.l.bf16 %v1422_v35 }
 0x283   :  { %v1030_v24 = vpack.c.bf16 %v1426_v20, %v1423_v21 }
 0x284   :  { %v1529_v19 = vpop.trf.xlu1 }
 0x285   :  { %v1533_v25 = vunpack.i.h.bf16 %v1529_v19  ;;  %v1530_v26 = vunpack.i.l.bf16 %v1529_v19  ;;  %1062 = vst [vmem:[#allocation8 + $0x40] sm:$0xff] %v1030_v24 }
 0x287   :  { %v1029_v29 = vpack.c.bf16 %v1533_v25, %v1530_v26 }
 0x288   :  { %v1427_v28 = vpop.trf.xlu0 }
 0x289   :  { %1061 = vst [vmem:[#allocation8 + $0x38] sm:$0xff] %v1029_v29  ;;  %v1431_v23 = vunpack.i.h.bf16 %v1427_v28  ;;  %v1428_v30 = vunpack.i.l.bf16 %v1427_v28 }
 0x28b   :  { %v1032_v34 = vpack.c.bf16 %v1431_v23, %v1428_v30 }
 0x28c   :  { %v1534_v32 = vpop.trf.xlu1 }
 0x28d   :  { %v1538_v33 = vunpack.i.h.bf16 %v1534_v32  ;;  %v1535_v27 = vunpack.i.l.bf16 %v1534_v32  ;;  %1064 = vst [vmem:[#allocation8 + $0x50] sm:$0xff] %v1032_v34 }
 0x28f   :  { %v1031_v44 = vpack.c.bf16 %v1538_v33, %v1535_v27 }
 0x290   :  { %v1432_v36 = vpop.trf.xlu0 }
 0x291   :  { %1063 = vst [vmem:[#allocation8 + $0x48] sm:$0xff] %v1031_v44  ;;  %v1436_v42 = vunpack.i.h.bf16 %v1432_v36  ;;  %v1433_v37 = vunpack.i.l.bf16 %v1432_v36 }
 0x293   :  { %v1034_v49 = vpack.c.bf16 %v1436_v42, %v1433_v37 }
 0x294   :  { %v1539_v31 = vpop.trf.xlu1 }
 0x295   :  { %v1543_v39 = vunpack.i.h.bf16 %v1539_v31  ;;  %v1540_v40 = vunpack.i.l.bf16 %v1539_v31  ;;  %1066 = vst [vmem:[#allocation8 + $0x60] sm:$0xff] %v1034_v49 }
 0x297   :  { %v1033_v56 = vpack.c.bf16 %v1543_v39, %v1540_v40 }
 0x298   :  { %v1437_v41 = vpop.trf.xlu0 }
 0x299   :  { %1065 = vst [vmem:[#allocation8 + $0x58] sm:$0xff] %v1033_v56  ;;  %v1441_v38 = vunpack.i.h.bf16 %v1437_v41  ;;  %v1438_v51 = vunpack.i.l.bf16 %v1437_v41 }
 0x29b   :  { %v1036_v62 = vpack.c.bf16 %v1441_v38, %v1438_v51 }
 0x29c   :  { %v1544_v45 = vpop.trf.xlu1 }
 0x29d   :  { %v1548_v46 = vunpack.i.h.bf16 %v1544_v45  ;;  %v1545_v43 = vunpack.i.l.bf16 %v1544_v45  ;;  %1068 = vst [vmem:[#allocation8 + $0x70] sm:$0xff] %v1036_v62 }
 0x29f   :  { %v1035_v7 = vpack.c.bf16 %v1548_v46, %v1545_v43 }
 0x2a0   :  { %v1442_v55 = vpop.trf.xlu0 }
 0x2a1   :  { %1067 = vst [vmem:[#allocation8 + $0x68] sm:$0xff] %v1035_v7  ;;  %v1446_v48 = vunpack.i.h.bf16 %v1442_v55  ;;  %v1443_v50 = vunpack.i.l.bf16 %v1442_v55 }
 0x2a3   :  { %v1038_v14 = vpack.c.bf16 %v1446_v48, %v1443_v50 }
 0x2a4   :  { %v1549_v47 = vpop.trf.xlu1 }
 0x2a5   :  { %v1553_v53 = vunpack.i.h.bf16 %v1549_v47  ;;  %v1550_v59 = vunpack.i.l.bf16 %v1549_v47  ;;  %1070 = vst [vmem:[#allocation8 + $0x80] sm:$0xff] %v1038_v14 }
 0x2a7   :  { %v1037_v54 = vpack.c.bf16 %v1553_v53, %v1550_v59 }
 0x2a8   :  { %v1447_v52 = vpop.trf.xlu0 }
 0x2a9   :  { %1069 = vst [vmem:[#allocation8 + $0x78] sm:$0xff] %v1037_v54  ;;  %v1451_v15 = vunpack.i.h.bf16 %v1447_v52  ;;  %v1448_v57 = vunpack.i.l.bf16 %v1447_v52 }
 0x2ab   :  { %v1040_v58 = vpack.c.bf16 %v1451_v15, %v1448_v57 }
 0x2ac   :  { %v1554_v1 = vpop.trf.xlu1 }
 0x2ad   :  { %v1558_v60 = vunpack.i.h.bf16 %v1554_v1  ;;  %v1555_v61 = vunpack.i.l.bf16 %v1554_v1  ;;  %1072 = vst [vmem:[#allocation8 + $0x90] sm:$0xff] %v1040_v58 }
 0x2af   :  { %v1039_v63 = vpack.c.bf16 %v1558_v60, %v1555_v61 }
 0x2b0   :  { %v1452_v2 = vpop.trf.xlu0 }
 0x2b1   :  { %1071 = vst [vmem:[#allocation8 + $0x88] sm:$0xff] %v1039_v63  ;;  %v1456_v22 = vunpack.i.h.bf16 %v1452_v2  ;;  %v1453_v16 = vunpack.i.l.bf16 %v1452_v2 }
 0x2b3   :  { %v1042_v0 = vpack.c.bf16 %v1456_v22, %v1453_v16 }
 0x2b4   :  { %v1559_v5 = vpop.trf.xlu1 }
 0x2b5   :  { %v1563_v3 = vunpack.i.h.bf16 %v1559_v5  ;;  %v1560_v4 = vunpack.i.l.bf16 %v1559_v5  ;;  %1074 = vst [vmem:[#allocation8 + $0xa0] sm:$0xff] %v1042_v0 }
 0x2b7   :  { %v1041_v6 = vpack.c.bf16 %v1563_v3, %v1560_v4 }
 0x2b8   :  { %v1457_v8 = vpop.trf.xlu0 }
 0x2b9   :  { %1073 = vst [vmem:[#allocation8 + $0x98] sm:$0xff] %v1041_v6  ;;  %v1461_v9 = vunpack.i.h.bf16 %v1457_v8  ;;  %v1458_v10 = vunpack.i.l.bf16 %v1457_v8 }
 0x2bb   :  { %v1044_v11 = vpack.c.bf16 %v1461_v9, %v1458_v10 }
 0x2bc   :  { %v1564_v12 = vpop.trf.xlu1 }
 0x2bd   :  { %v1568_v17 = vunpack.i.h.bf16 %v1564_v12  ;;  %v1565_v13 = vunpack.i.l.bf16 %v1564_v12  ;;  %1076 = vst [vmem:[#allocation8 + $0xb0] sm:$0xff] %v1044_v11 }
 0x2bf   :  { %v1043_v18 = vpack.c.bf16 %v1568_v17, %v1565_v13 }
 0x2c0   :  { %v1462_v35 = vpop.trf.xlu0 }
 0x2c1   :  { %1075 = vst [vmem:[#allocation8 + $0xa8] sm:$0xff] %v1043_v18  ;;  %v1466_v20 = vunpack.i.h.bf16 %v1462_v35  ;;  %v1463_v21 = vunpack.i.l.bf16 %v1462_v35 }
 0x2c3   :  { %v1046_v24 = vpack.c.bf16 %v1466_v20, %v1463_v21 }
 0x2c4   :  { %v1569_v19 = vpop.trf.xlu1 }
 0x2c5   :  { %v1573_v25 = vunpack.i.h.bf16 %v1569_v19  ;;  %v1570_v26 = vunpack.i.l.bf16 %v1569_v19  ;;  %1078 = vst [vmem:[#allocation8 + $0xc0] sm:$0xff] %v1046_v24 }
 0x2c7   :  { %v1045_v29 = vpack.c.bf16 %v1573_v25, %v1570_v26 }
 0x2c8   :  { %v1467_v28 = vpop.trf.xlu0 }
 0x2c9   :  { %1077 = vst [vmem:[#allocation8 + $0xb8] sm:$0xff] %v1045_v29  ;;  %v1471_v23 = vunpack.i.h.bf16 %v1467_v28  ;;  %v1468_v30 = vunpack.i.l.bf16 %v1467_v28 }
 0x2cb   :  { %v1048_v34 = vpack.c.bf16 %v1471_v23, %v1468_v30 }
 0x2cc   :  { %v1574_v32 = vpop.trf.xlu1 }
 0x2cd   :  { %v1578_v33 = vunpack.i.h.bf16 %v1574_v32  ;;  %v1575_v27 = vunpack.i.l.bf16 %v1574_v32  ;;  %1080 = vst [vmem:[#allocation8 + $0xd0] sm:$0xff] %v1048_v34 }
 0x2cf   :  { %v1047_v44 = vpack.c.bf16 %v1578_v33, %v1575_v27 }
 0x2d0   :  { %v1472_v36 = vpop.trf.xlu0 }
 0x2d1   :  { %1079 = vst [vmem:[#allocation8 + $0xc8] sm:$0xff] %v1047_v44  ;;  %v1476_v42 = vunpack.i.h.bf16 %v1472_v36  ;;  %v1473_v37 = vunpack.i.l.bf16 %v1472_v36 }
 0x2d3   :  { %v1050_v49 = vpack.c.bf16 %v1476_v42, %v1473_v37 }
 0x2d4   :  { %v1579_v31 = vpop.trf.xlu1 }
 0x2d5   :  { %v1583_v39 = vunpack.i.h.bf16 %v1579_v31  ;;  %v1580_v40 = vunpack.i.l.bf16 %v1579_v31  ;;  %1082 = vst [vmem:[#allocation8 + $0xe0] sm:$0xff] %v1050_v49 }
 0x2d7   :  { %v1049_v56 = vpack.c.bf16 %v1583_v39, %v1580_v40 }
 0x2d8   :  { %v1477_v41 = vpop.trf.xlu0 }
 0x2d9   :  { %1081 = vst [vmem:[#allocation8 + $0xd8] sm:$0xff] %v1049_v56  ;;  %v1481_v38 = vunpack.i.h.bf16 %v1477_v41  ;;  %v1478_v51 = vunpack.i.l.bf16 %v1477_v41 }
 0x2db   :  { %v1052_v62 = vpack.c.bf16 %v1481_v38, %v1478_v51 }
 0x2dc   :  { %v1584_v45 = vpop.trf.xlu1 }
 0x2dd   :  { %v1588_v46 = vunpack.i.h.bf16 %v1584_v45  ;;  %v1585_v43 = vunpack.i.l.bf16 %v1584_v45  ;;  %1084 = vst [vmem:[#allocation8 + $0xf0] sm:$0xff] %v1052_v62 }
 0x2df   :  { %v1051_v7 = vpack.c.bf16 %v1588_v46, %v1585_v43 }
 0x2e1   :  { %1083 = vst [vmem:[#allocation8 + $0xe8] sm:$0xff] %v1051_v7 }
 0x2e4   :  { %v1589_v55 = vpop.trf.xlu1 }
 0x2e5   :  { %v1593_v48 = vunpack.i.h.bf16 %v1589_v55  ;;  %v1590_v50 = vunpack.i.l.bf16 %v1589_v55 }
 0x2e7   :  { %v1053_v14 = vpack.c.bf16 %v1593_v48, %v1590_v50 }
 0x2e9   :  { %1085 = vst [vmem:[#allocation8 + $0xf8] sm:$0xff] %v1053_v14 }
 0x2ea   :  { %1098 = dma.vmem_to_hbm [thread:$0]  %s1091_s10, 4096, %s1093_s13, [#allocation4], %s1704_s14, %s1704_s14, %s1705_s15  }
 0x2eb   :  { %1696 = dma.done.wait [#allocation4], 4096  }
 0x2ec   :  { %1697 = vsyncadd [#allocation4], 4294963200 }
 0x2ed   :  { %1103 = vsyncpa [#allocation3], 1 }
 0x2ee   :  { %1104 = vsyncpa [#allocation6], 1 }
 0x2ef   :  { %1105 = vsyncpa [#allocation4], 1 }

</bundles_post_ra>
